<compile_context>
chip_gen: v7x
topology: tpu7x:2x2x1
jax: 0.10.0
libtpu: 0.0.40
codegen_flags: <defaults>
</compile_context>

<pallas_src>
import numpy as np
import jax
import jax.numpy as jnp
from jax.experimental import pallas as pl
from jax.experimental.pallas import tpu as pltpu

# ---------------- problem sizes (small, consistent with the module) -------------
NUM_FEATS = 8          # FcModel num_feats
OUT_CHS   = 4          # FcModel out_chs
FC1_OUT   = 32 - 4     # 28
FC2_DIM   = 32

GCN_IN    = 6          # GCN in_feats
GCN_HID   = 12         # GCN hidden_size
GCN_OUT   = 4          # GCN out_len
N_NODES   = 8          # nodes in the synthetic graph

LANES     = 32         # every feature axis padded to 32 lanes (max real width)

# ---- data-slab row layout (per-call tensors), all rows 32 lanes wide -----------
ROW_A   = 0            # rows  0:8   A_hat (8, 8)
ROW_R   = 8            # row   8     mean-nodes row r = (1/N) 1^T A_hat  (1, 8)
ROW_X   = 9            # row   9     x (1, NUM_FEATS)
ROW_H0  = 16           # rows 16:24  H0 node features (8, GCN_IN)
DATA_ROWS = 24

# ---- param-slab row layout (constants), every slot 8-sublane aligned -----------
ROW_B   = 0            # rows  0:6   biases: bg1, bg2, bg4, b1, b2, b3 (one/row)
ROW_WG1 = 8            # rows  8:16  wg1  real (6, 12)
ROW_WG2 = 16           # rows 16:32  wg2  real (12, 12)
ROW_WG4 = 32           # rows 32:48  wg4  real (12, 4)
ROW_W1  = 48           # rows 48:56  w1   real (8, 28)
ROW_W2A = 56           # rows 56:88  w2a  real (28, 32) = W2 rows [0, 28)
ROW_W2B = 88           # rows 88:96  w2b  real (4, 32)  = W2 rows [28, 32)
ROW_W3  = 96           # rows 96:128 w3   real (32, 4)
PARAM_ROWS = 128


# ------------------------------- Pallas kernel ----------------------------------
def fc_model_kernel(d_ref, p_ref, out_ref):
    f32 = jnp.float32
    dot = lambda a, b: jnp.dot(a, b, preferred_element_type=f32)

    # per-call data (lane-sliced to the real/padded contraction widths)
    A  = d_ref[ROW_A:ROW_A + 8, 0:8]          # (8, 8)  normalized adjacency
    r  = d_ref[ROW_R:ROW_R + 1, 0:8]          # (1, 8)  mean-nodes row
    x  = d_ref[ROW_X:ROW_X + 1, 0:8]          # (1, 8)  fc input
    h0 = d_ref[ROW_H0:ROW_H0 + 8, 0:8]        # (8, 8)  node feats (6 real)

    # biases (one per row, zero-padded to 32 lanes)
    bg1 = p_ref[0:1, :]
    bg2 = p_ref[1:2, :]
    bg4 = p_ref[2:3, :]
    b1  = p_ref[3:4, :]
    b2  = p_ref[4:5, :]
    b3  = p_ref[5:6, :]

    # weights (each slot zero-padded; contraction rows match activation padding)
    wg1 = p_ref[ROW_WG1:ROW_WG1 + 8, :]       # (8, 32)  real (6, 12)
    wg2 = p_ref[ROW_WG2:ROW_WG2 + 16, :]      # (16, 32) real (12, 12)
    wg4 = p_ref[ROW_WG4:ROW_WG4 + 16, :]      # (16, 32) real (12, 4)
    w1  = p_ref[ROW_W1:ROW_W1 + 8, :]         # (8, 32)  real (8, 28)
    w2a = p_ref[ROW_W2A:ROW_W2A + 32, :]      # (32, 32) real (28, 32)
    w2b = p_ref[ROW_W2B:ROW_W2B + 8, :]       # (8, 32)  real (4, 32)
    w3  = p_ref[ROW_W3:ROW_W3 + 32, :]        # (32, 32) real (32, 4)

    # ---- GCN branch: conv1 -> relu -> conv2 -> relu -> (mean_nodes o conv4) ----
    h = dot(A, dot(h0, wg1)) + bg1            # (8, 32), real lanes [0, 12)
    h = jnp.maximum(h, 0.0)

    h = dot(A, dot(h[:, 0:16], wg2)) + bg2    # (8, 32), real lanes [0, 12)
    h = jnp.maximum(h, 0.0)

    # mean_nodes(A @ (h @ Wg4) + bg4) == ((1/N) 1^T A @ h) @ Wg4 + bg4
    gs = dot(dot(r, h)[:, 0:16], wg4) + bg4   # (1, 32), real lanes [0, 4)

    # ---- FC trunk: fc1 -> relu -> cat(x1, gs) -> fc2 -> relu -> fc3 ----
    x1 = jnp.maximum(dot(x, w1) + b1, 0.0)    # (1, 32), lanes [28, 32) == 0

    # cat(x1, gs) @ W2 == x1 @ W2[:28] + gs @ W2[28:32]
    x2 = dot(x1, w2a) + dot(gs[:, 0:8], w2b) + b2
    x2 = jnp.maximum(x2, 0.0)

    out_ref[...] = dot(x2, w3) + b3           # real lanes [0, OUT_CHS)


def fc_model_forward(data_slab, param_slab):
    vmem = pl.BlockSpec(memory_space=pltpu.MemorySpace.VMEM)   # whole array in VMEM
    out = pl.pallas_call(
        fc_model_kernel,
        out_shape=jax.ShapeDtypeStruct((1, LANES), jnp.float32),
        in_specs=[vmem, vmem],
        out_specs=vmem,
    )(data_slab, param_slab)
    return out[0, :OUT_CHS]


# --------------------------- host-side slab packing -----------------------------
def pack_params(p):
    slab = np.zeros((PARAM_ROWS, LANES), np.float32)
    for i, b in enumerate([p["bg1"], p["bg2"], p["bg4"], p["b1"], p["b2"], p["b3"]]):
        b = np.asarray(b)
        slab[ROW_B + i, :b.shape[0]] = b
    placements = [(ROW_WG1, p["wg1"]), (ROW_WG2, p["wg2"]), (ROW_WG4, p["wg4"]),
                  (ROW_W1, p["w1"]), (ROW_W2A, p["w2"][:FC1_OUT, :]),
                  (ROW_W2B, p["w2"][FC1_OUT:, :]), (ROW_W3, p["w3"])]
    for row, w in placements:
        w = np.asarray(w)
        slab[row:row + w.shape[0], :w.shape[1]] = w
    return jnp.asarray(slab)


def pack_data(a_hat, mean_row, x, h0):
    slab = np.zeros((DATA_ROWS, LANES), np.float32)
    slab[ROW_A:ROW_A + N_NODES, :N_NODES] = np.asarray(a_hat)
    slab[ROW_R, :N_NODES] = np.asarray(mean_row).reshape(-1)
    slab[ROW_X, :NUM_FEATS] = np.asarray(x)
    slab[ROW_H0:ROW_H0 + N_NODES, :GCN_IN] = np.asarray(h0)
    return jnp.asarray(slab)


# ------------------------------ reference (plain JAX) ---------------------------
def reference(x, A_hat, H0, p):
    relu = lambda t: jnp.maximum(t, 0.0)
    h = relu(A_hat @ (H0 @ p["wg1"]) + p["bg1"])
    h = relu(A_hat @ (h @ p["wg2"]) + p["bg2"])
    h = A_hat @ (h @ p["wg4"]) + p["bg4"]
    graph_state = jnp.mean(h, axis=0)                         # (GCN_OUT,)
    x1 = relu(x @ p["w1"] + p["b1"])                          # (28,)
    cat = jnp.concatenate([x1, graph_state], axis=0)          # (32,)
    x2 = relu(cat @ p["w2"] + p["b2"])
    return x2 @ p["w3"] + p["b3"]


# ------------------------------------ main ---------------------------------------
if __name__ == "__main__":
    key = jax.random.PRNGKey(0)
    keys = jax.random.split(key, 16)

    # synthetic undirected ring graph on N_NODES nodes
    A = np.zeros((N_NODES, N_NODES), np.float32)
    for i in range(N_NODES):
        A[i, (i + 1) % N_NODES] = 1.0
        A[(i + 1) % N_NODES, i] = 1.0
    A = A + np.eye(N_NODES, dtype=np.float32)                 # dgl.add_self_loop
    d_inv_sqrt = 1.0 / np.sqrt(A.sum(axis=1))
    A_hat = jnp.asarray(d_inv_sqrt[:, None] * A * d_inv_sqrt[None, :])   # (8, 8)

    # mean_nodes folded into a single row: r = (1/N) * 1^T @ A_hat
    mean_row = (jnp.ones((1, N_NODES), jnp.float32) / N_NODES) @ A_hat   # (1, 8)

    H0 = jax.random.normal(keys[0], (N_NODES, GCN_IN), jnp.float32)
    x = jax.random.normal(keys[1], (NUM_FEATS,), jnp.float32)

    def w(k, shape):
        return jax.random.normal(k, shape, jnp.float32) * 0.1

    # weights stored as (in_features, out_features) so the kernel does y = x @ W + b
    params = {
        "wg1": w(keys[2], (GCN_IN, GCN_HID)),   "bg1": w(keys[3], (GCN_HID,)),
        "wg2": w(keys[4], (GCN_HID, GCN_HID)),  "bg2": w(keys[5], (GCN_HID,)),
        "wg4": w(keys[6], (GCN_HID, GCN_OUT)),  "bg4": w(keys[7], (GCN_OUT,)),
        "w1":  w(keys[8], (NUM_FEATS, FC1_OUT)), "b1": w(keys[9], (FC1_OUT,)),
        "w2":  w(keys[10], (FC2_DIM, FC2_DIM)),  "b2": w(keys[11], (FC2_DIM,)),
        "w3":  w(keys[12], (FC2_DIM, OUT_CHS)),  "b3": w(keys[13], (OUT_CHS,)),
    }

    param_slab = pack_params(params)                  # (128, 32) — packed once
    data_slab = pack_data(A_hat, mean_row, x, H0)     # (24, 32)  — per call

    out = fc_model_forward(data_slab, param_slab)
    out = jax.block_until_ready(out)

    ref = reference(x, A_hat, H0, params)
    np.testing.assert_allclose(np.asarray(out), np.asarray(ref), rtol=1e-3, atol=1e-5)

    print("KERNEL_OK")
</pallas_src>

<mosaic_0001>
module attributes {stable_mosaic.version = 11 : i64} {
  func.func @fc_model_kernel(%arg0: memref<24x32xf32, #tpu.memory_space<vmem>>, %arg1: memref<128x32xf32, #tpu.memory_space<vmem>>, %arg2: memref<1x32xf32, #tpu.memory_space<vmem>>) attributes {dimension_semantics = [], scalar_prefetch = 0 : i64, scratch_operands = 0 : i64, tpu.core_type = #tpu.core_type<tc>} {
    %c0 = arith.constant 0 : index
    %c0_0 = arith.constant 0 : index
    %0 = vector.load %arg0[%c0, %c0_0] : memref<24x32xf32, #tpu.memory_space<vmem>>, vector<8x8xf32>
    %c8 = arith.constant 8 : index
    %c0_1 = arith.constant 0 : index
    %1 = vector.load %arg0[%c8, %c0_1] : memref<24x32xf32, #tpu.memory_space<vmem>>, vector<1x8xf32>
    %c9 = arith.constant 9 : index
    %c0_2 = arith.constant 0 : index
    %2 = vector.load %arg0[%c9, %c0_2] : memref<24x32xf32, #tpu.memory_space<vmem>>, vector<1x8xf32>
    %c16 = arith.constant 16 : index
    %c0_3 = arith.constant 0 : index
    %3 = vector.load %arg0[%c16, %c0_3] : memref<24x32xf32, #tpu.memory_space<vmem>>, vector<8x8xf32>
    %c0_4 = arith.constant 0 : index
    %c0_5 = arith.constant 0 : index
    %4 = vector.load %arg1[%c0_4, %c0_5] : memref<128x32xf32, #tpu.memory_space<vmem>>, vector<1x32xf32>
    %c1 = arith.constant 1 : index
    %c0_6 = arith.constant 0 : index
    %5 = vector.load %arg1[%c1, %c0_6] : memref<128x32xf32, #tpu.memory_space<vmem>>, vector<1x32xf32>
    %c2 = arith.constant 2 : index
    %c0_7 = arith.constant 0 : index
    %6 = vector.load %arg1[%c2, %c0_7] : memref<128x32xf32, #tpu.memory_space<vmem>>, vector<1x32xf32>
    %c3 = arith.constant 3 : index
    %c0_8 = arith.constant 0 : index
    %7 = vector.load %arg1[%c3, %c0_8] : memref<128x32xf32, #tpu.memory_space<vmem>>, vector<1x32xf32>
    %c4 = arith.constant 4 : index
    %c0_9 = arith.constant 0 : index
    %8 = vector.load %arg1[%c4, %c0_9] : memref<128x32xf32, #tpu.memory_space<vmem>>, vector<1x32xf32>
    %c5 = arith.constant 5 : index
    %c0_10 = arith.constant 0 : index
    %9 = vector.load %arg1[%c5, %c0_10] : memref<128x32xf32, #tpu.memory_space<vmem>>, vector<1x32xf32>
    %c8_11 = arith.constant 8 : index
    %c0_12 = arith.constant 0 : index
    %10 = vector.load %arg1[%c8_11, %c0_12] : memref<128x32xf32, #tpu.memory_space<vmem>>, vector<8x32xf32>
    %c16_13 = arith.constant 16 : index
    %c0_14 = arith.constant 0 : index
    %11 = vector.load %arg1[%c16_13, %c0_14] : memref<128x32xf32, #tpu.memory_space<vmem>>, vector<16x32xf32>
    %c32 = arith.constant 32 : index
    %c0_15 = arith.constant 0 : index
    %12 = vector.load %arg1[%c32, %c0_15] : memref<128x32xf32, #tpu.memory_space<vmem>>, vector<16x32xf32>
    %c48 = arith.constant 48 : index
    %c0_16 = arith.constant 0 : index
    %13 = vector.load %arg1[%c48, %c0_16] : memref<128x32xf32, #tpu.memory_space<vmem>>, vector<8x32xf32>
    %c56 = arith.constant 56 : index
    %c0_17 = arith.constant 0 : index
    %14 = vector.load %arg1[%c56, %c0_17] : memref<128x32xf32, #tpu.memory_space<vmem>>, vector<32x32xf32>
    %c88 = arith.constant 88 : index
    %c0_18 = arith.constant 0 : index
    %15 = vector.load %arg1[%c88, %c0_18] : memref<128x32xf32, #tpu.memory_space<vmem>>, vector<8x32xf32>
    %c96 = arith.constant 96 : index
    %c0_19 = arith.constant 0 : index
    %16 = vector.load %arg1[%c96, %c0_19] : memref<128x32xf32, #tpu.memory_space<vmem>>, vector<32x32xf32>
    %cst = arith.constant dense<0.000000e+00> : vector<8x32xf32>
    %17 = tpu.matmul %3, %10, %cst {dimension_numbers = #tpu.dot_dimension_numbers<[1], [0], [0], [1], [0, 0, 1, 1], [], []>} : vector<8x8xf32>, vector<8x32xf32>, vector<8x32xf32> -> vector<8x32xf32>
    %cst_20 = arith.constant dense<0.000000e+00> : vector<8x32xf32>
    %18 = tpu.matmul %0, %17, %cst_20 {dimension_numbers = #tpu.dot_dimension_numbers<[1], [0], [0], [1], [0, 0, 1, 1], [], []>} : vector<8x8xf32>, vector<8x32xf32>, vector<8x32xf32> -> vector<8x32xf32>
    %19 = vector.broadcast %4 : vector<1x32xf32> to vector<8x32xf32>
    %20 = arith.addf %18, %19 : vector<8x32xf32>
    %cst_21 = arith.constant 0.000000e+00 : f32
    %21 = vector.broadcast %cst_21 : f32 to vector<8x32xf32>
    %22 = arith.maximumf %20, %21 : vector<8x32xf32>
    %23 = vector.extract_strided_slice %22 {offsets = [0, 0], sizes = [8, 16], strides = [1, 1]} : vector<8x32xf32> to vector<8x16xf32>
    %cst_22 = arith.constant dense<0.000000e+00> : vector<8x32xf32>
    %24 = tpu.matmul %23, %11, %cst_22 {dimension_numbers = #tpu.dot_dimension_numbers<[1], [0], [0], [1], [0, 0, 1, 1], [], []>} : vector<8x16xf32>, vector<16x32xf32>, vector<8x32xf32> -> vector<8x32xf32>
    %cst_23 = arith.constant dense<0.000000e+00> : vector<8x32xf32>
    %25 = tpu.matmul %0, %24, %cst_23 {dimension_numbers = #tpu.dot_dimension_numbers<[1], [0], [0], [1], [0, 0, 1, 1], [], []>} : vector<8x8xf32>, vector<8x32xf32>, vector<8x32xf32> -> vector<8x32xf32>
    %26 = vector.broadcast %5 : vector<1x32xf32> to vector<8x32xf32>
    %27 = arith.addf %25, %26 : vector<8x32xf32>
    %cst_24 = arith.constant 0.000000e+00 : f32
    %28 = vector.broadcast %cst_24 : f32 to vector<8x32xf32>
    %29 = arith.maximumf %27, %28 : vector<8x32xf32>
    %cst_25 = arith.constant dense<0.000000e+00> : vector<1x32xf32>
    %30 = tpu.matmul %1, %29, %cst_25 {dimension_numbers = #tpu.dot_dimension_numbers<[1], [0], [0], [1], [0, 0, 1, 1], [], []>} : vector<1x8xf32>, vector<8x32xf32>, vector<1x32xf32> -> vector<1x32xf32>
    %31 = vector.extract_strided_slice %30 {offsets = [0, 0], sizes = [1, 16], strides = [1, 1]} : vector<1x32xf32> to vector<1x16xf32>
    %cst_26 = arith.constant dense<0.000000e+00> : vector<1x32xf32>
    %32 = tpu.matmul %31, %12, %cst_26 {dimension_numbers = #tpu.dot_dimension_numbers<[1], [0], [0], [1], [0, 0, 1, 1], [], []>} : vector<1x16xf32>, vector<16x32xf32>, vector<1x32xf32> -> vector<1x32xf32>
    %33 = arith.addf %32, %6 : vector<1x32xf32>
    %cst_27 = arith.constant dense<0.000000e+00> : vector<1x32xf32>
    %34 = tpu.matmul %2, %13, %cst_27 {dimension_numbers = #tpu.dot_dimension_numbers<[1], [0], [0], [1], [0, 0, 1, 1], [], []>} : vector<1x8xf32>, vector<8x32xf32>, vector<1x32xf32> -> vector<1x32xf32>
    %35 = arith.addf %34, %7 : vector<1x32xf32>
    %cst_28 = arith.constant 0.000000e+00 : f32
    %36 = vector.broadcast %cst_28 : f32 to vector<1x32xf32>
    %37 = arith.maximumf %35, %36 : vector<1x32xf32>
    %cst_29 = arith.constant dense<0.000000e+00> : vector<1x32xf32>
    %38 = tpu.matmul %37, %14, %cst_29 {dimension_numbers = #tpu.dot_dimension_numbers<[1], [0], [0], [1], [0, 0, 1, 1], [], []>} : vector<1x32xf32>, vector<32x32xf32>, vector<1x32xf32> -> vector<1x32xf32>
    %39 = vector.extract_strided_slice %33 {offsets = [0, 0], sizes = [1, 8], strides = [1, 1]} : vector<1x32xf32> to vector<1x8xf32>
    %cst_30 = arith.constant dense<0.000000e+00> : vector<1x32xf32>
    %40 = tpu.matmul %39, %15, %cst_30 {dimension_numbers = #tpu.dot_dimension_numbers<[1], [0], [0], [1], [0, 0, 1, 1], [], []>} : vector<1x8xf32>, vector<8x32xf32>, vector<1x32xf32> -> vector<1x32xf32>
    %41 = arith.addf %38, %40 : vector<1x32xf32>
    %42 = arith.addf %41, %8 : vector<1x32xf32>
    %cst_31 = arith.constant 0.000000e+00 : f32
    %43 = vector.broadcast %cst_31 : f32 to vector<1x32xf32>
    %44 = arith.maximumf %42, %43 : vector<1x32xf32>
    %cst_32 = arith.constant dense<0.000000e+00> : vector<1x32xf32>
    %45 = tpu.matmul %44, %16, %cst_32 {dimension_numbers = #tpu.dot_dimension_numbers<[1], [0], [0], [1], [0, 0, 1, 1], [], []>} : vector<1x32xf32>, vector<32x32xf32>, vector<1x32xf32> -> vector<1x32xf32>
    %46 = arith.addf %45, %9 : vector<1x32xf32>
    %c0_33 = arith.constant 0 : index
    %c0_34 = arith.constant 0 : index
    %47 = vector.load %arg2[%c0_33, %c0_34] : memref<1x32xf32, #tpu.memory_space<vmem>>, vector<1x32xf32>
    tpu.vector_store %arg2[%c0_33, %c0_34], %46 {strides = array<i32>} : memref<1x32xf32, #tpu.memory_space<vmem>>, vector<1x32xf32>,
    return
  }
}

</mosaic_0001>

<bundles_post_ra>
// kernel: tpu_custom_call.1
= control target key start
LH: loop header
LB: loop body
LE: loop exit
PB: predicated region body
PF: predicated region fallthrough
CT: control target
= control target key end

     0   :  { %vm37_vm0 = vcmask 64512   ;;  %v948_v2 = vmov 0.0   ;;  %vm949_vm1 = vmmov 0   ;;  %s1096_s0 = inlined_call_operand.vmem [shape: f32[24,32], index: 0, kind: input, shape index: {}]   ;;  %s1097_s1 = inlined_call_operand.vmem [shape: f32[128,32], index: 1, kind: input, shape index: {}]   ;;  %s1098_s2 = inlined_call_operand.hbm [shape: f32[1,32], index: 2, kind: output, shape index: {}]  }
   0x1   :  { %v22_v0 = vld [vmem:[%s1097_s1 + $0x8] sm:$0xff]  ;;  %v15_v1 = vld [vmem:[%s1096_s0 + $0x10] sm:$0xff]  ;;  %836 = vmatprep.subr.mxu0 %v948_v2  ;;  %838 = vmatprep.mubr.msk.f32.mxu0 %vm949_vm1, %v948_v2 }
   0x2   :  { %7 = vsyncpa [#allocation3], 0  ;;  %837 = vmatpush3.msra.mxu0 %v22_v0  ;;  %841 = vmatprep.subr.mxu1 %v948_v2  ;;  %v12_v3 = vld [vmem:[%s1096_s0] sm:$0xff]  ;;  %v23_v6 = vld [vmem:[%s1097_s1 + $0x10] sm:$0xff]  ;;  %v950_v9 = vmov 0.0|0.0   ;;  %vm189_vm2 = vcmask 130048  }
   0x3   :  { %839 = vmatmul.mubr.msk.f32.vlgmr.msra.gmra.mrb[0].mxu0 %vm37_vm0, %v15_v1  ;;  %843 = vmatprep.mubr.msk.f32.mxu1 %vm949_vm1, %v948_v2  ;;  %v24_v7 = vld [vmem:[%s1097_s1 + $0x18] sm:$0xff]  ;;  %v797_v10 = vld [vmem:[%s1097_s1] ss:$0 sm:$0xff]  ;;  %v26_v18 = vld [vmem:[%s1097_s1 + $0x28] sm:$0xff]  ;;  %vm631_vm3 = vcmask 261120   ;;  %s951_s30 = smov [#allocation2]  }
   0x4   :  { %850 = vmatprep.mubr.msk.f32.mxu0 %vm949_vm1, %v948_v2  ;;  %v903_v8 = vpack.c.bf16 %v24_v7, %v23_v6  ;;  %902 = vmatprep.subr.bf16.mxu0 %v950_v9  ;;  %v25_v17 = vld [vmem:[%s1097_s1 + $0x20] sm:$0xff]  ;;  %v13_v25 = vld [vmem:[%s1096_s0 + $0x8] sm:$0x1]  ;;  %v27_v26 = vld [vmem:[%s1097_s1 + $0x30] sm:$0xff]  ;;  %s788_s3 = sshll.u32 %s951_s30, 4  ;;  %vm780_vm4 = vcmask 253952   ;;  %s789_s3 = int_to_ptr.vmem [resolvable:$true] %s788_s3 }
   0x5   :  { %v906_v19 = vpack.c.bf16 %v26_v18, %v25_v17  ;;  %v800_v20 = vld [vmem:[%s1097_s1 + $0x1] ss:$0 sm:$0xff]  ;;  %v14_v27 = vld [vmem:[%s1096_s0 + $0x9] sm:$0x1]  ;;  %v28_v28 = vld [vmem:[%s1097_s1 + $0x38] sm:$0xff]  ;;  %s924_s4 = scalar_lea.vmem %s789_s3, 16  ;;  %p929_p1 = scmp.lt.s32.totalorder %s789_s3, %s789_s3 }
   0x6   :  { %904 = vmatpush3.bf16.msra.mxu0 %v903_v8  ;;  %v29_v29 = vld [vmem:[%s1097_s1 + $0x40] sm:$0xff]  ;;  %v30_v37 = vld [vmem:[%s1097_s1 + $0x48] sm:$0xff]  ;;  %v31_v38 = vld [vmem:[%s1097_s1 + $0x50] sm:$0xff]  ;;  %p925_p0 = scmp.ne.s32.totalorder %s789_s3, %s924_s4  ;;  %s928_s5 = scalar_lea.vmem %s789_s3, 32 }
   0x7   :  { %858 = vmatprep.subr.mxu0 %v948_v2  ;;  %v909_v30 = vpack.c.bf16 %v29_v29, %v28_v28  ;;  %v19_v35 = vld [vmem:[%s1097_s1 + $0x3] sm:$0x1]  ;;  %v912_v39 = vpack.c.bf16 %v31_v38, %v30_v37  ;;  %v32_v41 = vld [vmem:[%s1097_s1 + $0x58] sm:$0xff]  ;;  %v18_v42 = vld [vmem:[%s1097_s1 + $0x2] sm:$0x1]  ;;  %p930_p2 = scmp.lt.s32.totalorder %s928_s5, %s924_s4 }
   0x8   :  { %v33_v46 = vld [vmem:[%s1097_s1 + $0x60] sm:$0xff]  ;;  %v34_v47 = vld [vmem:[%s1097_s1 + $0x68] sm:$0xff]  ;;  %v35_v51 = vld [vmem:[%s1097_s1 + $0x70] sm:$0xff] }
   0x9   :  { %v915_v48 = vpack.c.bf16 %v34_v47, %v33_v46  ;;  %v36_v52 = vld [vmem:[%s1097_s1 + $0x78] sm:$0xff]  ;;  %v20_v55 = vld [vmem:[%s1097_s1 + $0x4] sm:$0x1]  ;;  %v21_v60 = vld [vmem:[%s1097_s1 + $0x5] sm:$0x1]  ;;  %p931_p3 = por %p930_p2, %p929_p1 }
   0xa   :  { %v918_v53 = vpack.c.bf16 %v36_v52, %v35_v51 }
   0xb   :  { %p932_p4 = pnand %p931_p3, %p925_p0 }
  0xd6   :  { %v107_v4 = vpop.f32.mrb[0].mxu0 }
  0xd7   :  { %v840_v5 = vpop.f32.mrb[1].mxu0  ;;  %842 = vmatpush3.msra.mxu1 %v107_v4 }
  0xd8   :  { %844 = vmatmul.mubr.msk.f32.vlgmr.msra.gmra.mrb[0].mxu1 %vm37_vm0, %v12_v3  ;;  %853 = vmatprep.subr.mxu1 %v948_v2 }
  0xd9   :  { %855 = vmatprep.mubr.msk.f32.mxu1 %vm949_vm1, %v948_v2 }
 0x1ab   :  { %v184_v11 = vpop.f32.mrb[0].mxu1 }
 0x1ac   :  { %v185_v12 = vadd.f32 %v797_v10, %v184_v11  ;;  %v845_v13 = vpop.f32.mrb[1].mxu1 }
 0x1ae   :  { %v188_v14 = vmax.f32 %v185_v12, 0.0 }
 0x1b0   :  { %851 = vmatmul.mubr.msk.f32.vlgmr.msra.gmra.mrb[2].mxu0 %vm189_vm2, %v188_v14 }
 0x1b1   :  { %860 = vmatprep.mubr.msk.f32.mxu0 %vm949_vm1, %v948_v2 }
 0x283   :  { %v259_v15 = vpop.f32.mrb[2].mxu0 }
 0x284   :  { %v852_v16 = vpop.f32.mrb[3].mxu0  ;;  %854 = vmatpush3.msra.mxu1 %v259_v15 }
 0x285   :  { %856 = vmatmul.mubr.msk.f32.vlgmr.msra.gmra.mrb[2].mxu1 %vm37_vm0, %v12_v3  ;;  %905 = vmatprep.subr.bf16.mxu1 %v950_v9 }
 0x286   :  { %867 = vmatprep.mubr.msk.f32.mxu1 %vm949_vm1, %v948_v2  ;;  %907 = vmatpush3.bf16.msra.mxu1 %v906_v19 }
 0x287   :  { %875 = vmatprep.subr.mxu1 %v948_v2 }
 0x358   :  { %v333_v21 = vpop.f32.mrb[2].mxu1 }
 0x359   :  { %v334_v22 = vadd.f32 %v800_v20, %v333_v21  ;;  %v857_v23 = vpop.f32.mrb[3].mxu1 }
 0x35b   :  { %v337_v24 = vmax.f32 %v334_v22, 0.0 }
 0x35d   :  { %859 = vmatpush3.msra.mxu0 %v337_v24 }
 0x35e   :  { %861 = vmatmul.mubr.msk.f32.vlgmr.msra.gmra.mrb[4].mxu0 %vm37_vm0, %v13_v25  ;;  %870 = vmatprep.subr.mxu0 %v948_v2 }
 0x35f   :  { %871 = vmatpush3.msra.mxu0 %v27_v26  ;;  %872 = vmatprep.mubr.msk.f32.mxu0 %vm949_vm1, %v948_v2 }
 0x360   :  { %908 = vmatprep.subr.bf16.mxu0 %v950_v9 }
 0x362   :  { %873 = vmatmul.mubr.msk.f32.vlgmr.msra.gmra.mrb[6].mxu0 %vm37_vm0, %v14_v27 }
 0x363   :  { %888 = vmatprep.mubr.msk.f32.mxu0 %vm949_vm1, %v948_v2  ;;  %910 = vmatpush3.bf16.msra.mxu0 %v909_v30 }
 0x364   :  { %911 = vmatprep.subr.bf16.mxu0 %v950_v9 }
 0x367   :  { %913 = vmatpush3.bf16.msra.mxu0 %v912_v39 }
 0x431   :  { %v407_v31 = vpop.f32.mrb[4].mxu0 }
 0x432   :  { %v862_v32 = vpop.f32.mrb[5].mxu0  ;;  %868 = vmatmul.mubr.msk.f32.vlgmr.msra.gmra.mrb[4].mxu1 %vm189_vm2, %v407_v31 }
 0x433   :  { %877 = vmatprep.mubr.msk.f32.mxu1 %vm949_vm1, %v948_v2  ;;  %876 = vmatpush3.msra.mxu1 %v32_v41 }
 0x434   :  { %914 = vmatprep.subr.bf16.mxu1 %v950_v9 }
 0x435   :  { %v553_v33 = vpop.f32.mrb[6].mxu0 }
 0x436   :  { %v874_v34 = vpop.f32.mrb[7].mxu0  ;;  %v554_v36 = vadd.f32 %v553_v33, %v19_v35 }
 0x438   :  { %v557_v40 = vmax.f32 %v554_v36, 0.0 }
 0x43a   :  { %889 = vmatmul.mubr.msk.f32.vlgmr.msra.gmra.mrb[8].mxu0 %vm631_vm3, %v557_v40 }
 0x505   :  { %v480_v43 = vpop.f32.mrb[4].mxu1 }
 0x506   :  { %v481_v44 = vadd.f32 %v480_v43, %v18_v42  ;;  %v869_v45 = vpop.f32.mrb[5].mxu1 }
 0x508   :  { %878 = vmatmul.mubr.msk.f32.vlgmr.msra.gmra.mrb[6].mxu1 %vm37_vm0, %v481_v44 }
 0x509   :  { %899 = vmatprep.mubr.msk.f32.mxu1 %vm949_vm1, %v948_v2  ;;  %916 = vmatpush3.bf16.msra.mxu1 %v915_v48 }
 0x50a   :  { %917 = vmatprep.subr.bf16.mxu1 %v950_v9 }
 0x50d   :  { %v701_v49 = vpop.f32.mrb[8].mxu0  ;;  %919 = vmatpush3.bf16.msra.mxu1 %v918_v53 }
 0x50e   :  { %v890_v50 = vpop.f32.mrb[9].mxu0 }
 0x5db   :  { %v627_v54 = vpop.f32.mrb[6].mxu1 }
 0x5dc   :  { %v702_v56 = vadd.f32 %v701_v49, %v627_v54  ;;  %v879_v57 = vpop.f32.mrb[7].mxu1 }
 0x5de   :  { %v705_v58 = vadd.f32 %v702_v56, %v20_v55 }
 0x5e0   :  { %v706_v59 = vmax.f32 %v705_v58, 0.0 }
 0x5e2   :  { %900 = vmatmul.mubr.msk.f32.vlgmr.msra.gmra.mrb[8].mxu1 %vm631_vm3, %v706_v59 }
 0x6b5   :  { %v776_v61 = vpop.f32.mrb[8].mxu1 }
 0x6b6   :  { %v777_v62 = vadd.f32 %v776_v61, %v21_v60  ;;  %v901_v63 = vpop.f32.mrb[9].mxu1 }
 0x6b8   :  { %781 = vst.msk [vmem:[#allocation2] sm:$0x1] %vm780_vm4, %v777_v62 }
 0x6b9   :  { %935 = shalt.err (!%p932_p4)
}
 0x6ba   :  { %s936_s1 = scalar_lea.hbm %s1098_s2, 16 }
 0x6bb   :  { %p937_p5 = scmp.ne.s32.totalorder %s1098_s2, %s936_s1  ;;  %p940_p6 = scmp.lt.u32.totalorder %s936_s1, %s1098_s2 }
 0x6bd   :  { %p942_p7 = pnand %p940_p6, %p937_p5 }
 0x6bf   :  { %945 = shalt.err (!%p942_p7)
}
 0x6c0   :  { %791 = dma.vmem_to_hbm [thread:$0]  %s789_s3, 16, %s1098_s2, [#allocation3]  }
 0x6c1   :  { %946 = dma.done.wait [#allocation3], 16  }
 0x6c2   :  { %947 = vsyncadd [#allocation3], 4294967280 }
 0x6c3   :  { %795 = vsyncpa [#allocation3], 1 }

</bundles_post_ra>
